<compile_context>
chip_gen: v5e
topology: v5e:2x2
jax: 0.10.0
libtpu: 0.0.40
codegen_flags: <defaults>
</compile_context>

<pallas_src>
import functools

import jax
import jax.numpy as jnp
from jax.experimental import pallas as pl
from jax.experimental.pallas import tpu as pltpu

EMB_DIM = 64
DIST_DIM = 2
NUM_HIDDEN = 2
MIN_STD = 0.01
LN_EPS = 1e-5  # PyTorch nn.LayerNorm default


def _round_up(x, m):
    return ((x + m - 1) // m) * m


def _normalize(x):
    # LayerNorm normalization only (affine is folded into the next linear).
    mu = jnp.mean(x, axis=-1, keepdims=True)
    xc = x - mu
    var = jnp.mean(xc * xc, axis=-1, keepdims=True)
    return xc * jax.lax.rsqrt(var + LN_EPS)


def _res_output_kernel(
    x_ref,     # (TM, D)                   input rows, native dtype
    vecs_ref,  # (2*NUM_HIDDEN, D)   f32   per block: [b1' = beta@w1+b1, b2]
    w_ref,     # (2*NUM_HIDDEN, D, D) bf16 per block: [w1' = diag(g)@w1, w2]
    wo_ref,    # (D, 2*DIST_DIM)     bf16  folded output weight [lno_g*(wo*out_std) | 0]
    bo_ref,    # (1, 2*DIST_DIM)     f32   folded output bias   [mean part | std part]
    o_ref,     # (TM, 2*DIST_DIM)
    *,
    n_sub,
):
    tm = x_ref.shape[0]
    sub = tm // n_sub

    vecs = vecs_ref[...]
    ws = [w_ref[j] for j in range(2 * NUM_HIDDEN)]   # (D, D) bf16 each
    wo = wo_ref[...]
    bo = bo_ref[...]

    # Independent row sub-slabs -> independent dependency chains for ILP.
    for s in range(n_sub):
        x = x_ref[pl.ds(s * sub, sub), :].astype(jnp.float32)
        for i in range(NUM_HIDDEN):
            b1 = vecs[2 * i + 0 : 2 * i + 1, :]
            b2 = vecs[2 * i + 1 : 2 * i + 2, :]
            h = _normalize(x)
            h = jnp.dot(h.astype(jnp.bfloat16), ws[2 * i],
                        preferred_element_type=jnp.float32) + b1
            h = jnp.maximum(h, 0.0)
            h = jnp.dot(h.astype(jnp.bfloat16), ws[2 * i + 1],
                        preferred_element_type=jnp.float32) + b2
            x = x + h
        h = _normalize(x)
        out = jnp.dot(h.astype(jnp.bfloat16), wo,
                      preferred_element_type=jnp.float32) + bo
        o_ref[pl.ds(s * sub, sub), :] = out.astype(o_ref.dtype)


def init_params(key, emb_dim=EMB_DIM, dist_dim=DIST_DIM, num_hidden=NUM_HIDDEN):
    # Non-trivial LN affines / output affines so the folding is actually tested.
    ks = jax.random.split(key, 12)
    scale = 1.0 / jnp.sqrt(emb_dim)
    return dict(
        ln_g=1.0 + 0.1 * jax.random.normal(ks[0], (num_hidden, 1, emb_dim), jnp.float32),
        ln_b=0.1 * jax.random.normal(ks[1], (num_hidden, 1, emb_dim), jnp.float32),
        w1=jax.random.normal(ks[2], (num_hidden, emb_dim, emb_dim), jnp.float32) * scale,
        b1=0.01 * jax.random.normal(ks[3], (num_hidden, 1, emb_dim), jnp.float32),
        w2=jax.random.normal(ks[4], (num_hidden, emb_dim, emb_dim), jnp.float32) * scale,
        b2=0.01 * jax.random.normal(ks[5], (num_hidden, 1, emb_dim), jnp.float32),
        lno_g=1.0 + 0.1 * jax.random.normal(ks[6], (1, emb_dim), jnp.float32),
        lno_b=0.1 * jax.random.normal(ks[7], (1, emb_dim), jnp.float32),
        wo=jax.random.normal(ks[8], (emb_dim, dist_dim), jnp.float32) * scale,
        bo=0.01 * jax.random.normal(ks[9], (1, dist_dim), jnp.float32),
        log_std=0.1 * jax.random.normal(ks[10], (1, dist_dim), jnp.float32),
        out_std=0.5 + jax.random.uniform(ks[11], (1, dist_dim), jnp.float32),
        out_mean=jnp.full((1, dist_dim), 0.1, jnp.float32),
    )


def pack_params(params):
    """Pack/fold parameters once (outside the per-call path).

    Folds each LayerNorm affine into the following linear and folds
    out_std / out_mean / (min_std + exp(log_std)) into the final linear.
    """
    g = params["ln_g"][:, 0, :]       # (H, D)
    b = params["ln_b"][:, 0, :]       # (H, D)
    w1 = params["w1"]                 # (H, D, D)
    b1 = params["b1"][:, 0, :]        # (H, D)
    w2 = params["w2"]                 # (H, D, D)
    b2 = params["b2"][:, 0, :]        # (H, D)

    w1f = g[:, :, None] * w1                                   # diag(g) @ w1
    b1f = jnp.einsum("hd,hdo->ho", b, w1) + b1                 # beta @ w1 + b1

    # Per block interleave: [w1f_i, w2_i]  /  [b1f_i, b2_i].
    w_stack = jnp.stack([w1f, w2], axis=1).reshape(
        -1, EMB_DIM, EMB_DIM).astype(jnp.bfloat16)             # (2H, D, D) bf16
    vecs = jnp.stack([b1f, b2], axis=1).reshape(-1, EMB_DIM)   # (2H, D)    f32

    # Output head: fold out_std / out_mean / std, then the final LN affine.
    wo_ext = jnp.concatenate(
        [params["wo"] * params["out_std"],
         jnp.zeros((EMB_DIM, DIST_DIM), jnp.float32)], axis=1)          # (D, 2*DIST)
    std = (MIN_STD + jnp.exp(params["log_std"])) * params["out_std"]    # (1, DIST)
    bo_ext = jnp.concatenate(
        [params["bo"] * params["out_std"] + params["out_mean"], std], axis=1)  # (1, 2*DIST)
    wo_fold = (params["lno_g"].reshape(EMB_DIM, 1) * wo_ext).astype(jnp.bfloat16)
    bo_fold = params["lno_b"] @ wo_ext + bo_ext                          # (1, 2*DIST) f32
    return vecs, w_stack, wo_fold, bo_fold


@functools.partial(jax.jit, static_argnames=("tm",))
def res_output_forward(x, packed, *, tm=2048):
    """x: (..., EMB_DIM), packed = pack_params(params) -> (..., 2*DIST_DIM)."""
    start_shape = x.shape[:-1]
    xf = x.reshape((-1, EMB_DIM))          # keep native dtype; kernel upcasts
    n = xf.shape[0]

    # Row tile: multiple of 8, capped so the row grid has >= ~4 steps
    # (keeps both v7x TensorCores busy; harmless on v5e/v6e).
    tm_eff = min(tm, max(8, _round_up(-(-n // 4), 8)))
    grid = (pl.cdiv(n, tm_eff),)

    # Static in-kernel sub-slab count (each sub-slab a multiple of 8 rows).
    if tm_eff % 32 == 0:
        n_sub = 4
    elif tm_eff % 16 == 0:
        n_sub = 2
    else:
        n_sub = 1

    vecs, w_stack, wo_f, bo_f = packed

    def full(shape):
        nd = len(shape)
        return pl.BlockSpec(shape, lambda i: (0,) * nd)

    out = pl.pallas_call(
        functools.partial(_res_output_kernel, n_sub=n_sub),
        out_shape=jax.ShapeDtypeStruct((n, 2 * DIST_DIM), jnp.float32),
        grid_spec=pltpu.PrefetchScalarGridSpec(
            num_scalar_prefetch=0,
            grid=grid,
            in_specs=[
                pl.BlockSpec((tm_eff, EMB_DIM), lambda i: (i, 0)),   # x rows
                full((2 * NUM_HIDDEN, EMB_DIM)),                     # folded biases
                full((2 * NUM_HIDDEN, EMB_DIM, EMB_DIM)),            # folded weights (bf16)
                full((EMB_DIM, 2 * DIST_DIM)),                       # folded wo (bf16)
                full((1, 2 * DIST_DIM)),                             # folded bo (+ std)
            ],
            out_specs=pl.BlockSpec((tm_eff, 2 * DIST_DIM), lambda i: (i, 0)),
        ),
        compiler_params=pltpu.CompilerParams(
            dimension_semantics=("parallel",)),
    )(xf, vecs, w_stack, wo_f, bo_f)

    return out.reshape((*start_shape, 2 * DIST_DIM))


def _layernorm_ref(x, gamma, beta):
    mu = jnp.mean(x, axis=-1, keepdims=True)
    xc = x - mu
    var = jnp.mean(xc * xc, axis=-1, keepdims=True)
    return xc * jax.lax.rsqrt(var + LN_EPS) * gamma + beta


def res_output_forward_ref(x, params):
    """Pure-JAX f32 reference mirroring the PyTorch forward."""
    start_shape = x.shape[:-1]
    h = x.reshape((-1, EMB_DIM)).astype(jnp.float32)
    for i in range(NUM_HIDDEN):
        y = _layernorm_ref(h, params["ln_g"][i], params["ln_b"][i])
        y = jnp.maximum(y @ params["w1"][i] + params["b1"][i], 0.0)
        y = y @ params["w2"][i] + params["b2"][i]
        h = h + y
    out = _layernorm_ref(h, params["lno_g"], params["lno_b"]) @ params["wo"] + params["bo"]
    mean = out * params["out_std"] + params["out_mean"]
    std = (MIN_STD + jnp.exp(params["log_std"])) * params["out_std"]
    std = jnp.broadcast_to(std, mean.shape)
    return jnp.concatenate([mean, std], axis=-1).reshape((*start_shape, 2 * DIST_DIM))


if __name__ == "__main__":
    key = jax.random.PRNGKey(0)
    kx, kx2, kx3, kp = jax.random.split(key, 4)
    params = init_params(kp)
    packed = pack_params(params)   # packed once, outside the per-call path

    # agent_decoder_state: (batch=2, seq=8, emb_dim=64)
    x = jax.random.normal(kx, (2, 8, EMB_DIM), jnp.float32)
    out = res_output_forward(x, packed)
    jax.block_until_ready(out)
    ref = res_output_forward_ref(x, params)
    assert out.shape == (2, 8, 2 * DIST_DIM), out.shape
    assert jnp.allclose(out, ref, atol=5e-2, rtol=5e-2), "mismatch vs reference"

    # Row count not a multiple of 8 / tile -> exercises partial last block.
    x2 = jax.random.normal(kx2, (3, 7, EMB_DIM), jnp.float32)
    out2 = res_output_forward(x2, packed)
    jax.block_until_ready(out2)
    ref2 = res_output_forward_ref(x2, params)
    assert out2.shape == (3, 7, 2 * DIST_DIM), out2.shape
    assert jnp.allclose(out2, ref2, atol=5e-2, rtol=5e-2), "mismatch vs reference (partial block)"

    # Native bf16 activations (no wrapper-side upcast copy).
    x3 = jax.random.normal(kx3, (4, 5, EMB_DIM), jnp.float32).astype(jnp.bfloat16)
    out3 = res_output_forward(x3, packed)
    jax.block_until_ready(out3)
    ref3 = res_output_forward_ref(x3, params)
    assert out3.shape == (4, 5, 2 * DIST_DIM), out3.shape
    assert jnp.allclose(out3, ref3, atol=1e-1, rtol=1e-1), "mismatch vs reference (bf16 input)"

    print("KERNEL_OK")
</pallas_src>

<mosaic_0001>
module attributes {stable_mosaic.version = 11 : i64} {
  func.func @_res_output_kernel(%arg0: i32, %arg1: memref<8x64xf32, #tpu.memory_space<vmem>>, %arg2: memref<4x64xf32, #tpu.memory_space<vmem>>, %arg3: memref<4x64x64xbf16, #tpu.memory_space<vmem>>, %arg4: memref<64x4xbf16, #tpu.memory_space<vmem>>, %arg5: memref<1x4xf32, #tpu.memory_space<vmem>>, %arg6: memref<8x4xf32, #tpu.memory_space<vmem>>) attributes {dimension_semantics = [#tpu.dimension_semantics<parallel>], iteration_bounds = array<i64: 2>, scalar_prefetch = 0 : i64, scratch_operands = 0 : i64, tpu.core_type = #tpu.core_type<tc>, window_params = [{transform_indices = @transform_0, window_bounds = array<i64: 8, 64>}, {pipeline_mode = #tpu.pipeline_mode<synchronous>, transform_indices = @transform_1, window_bounds = array<i64: 4, 64>}, {pipeline_mode = #tpu.pipeline_mode<synchronous>, transform_indices = @transform_2, window_bounds = array<i64: 4, 64, 64>}, {pipeline_mode = #tpu.pipeline_mode<synchronous>, transform_indices = @transform_3, window_bounds = array<i64: 64, 4>}, {pipeline_mode = #tpu.pipeline_mode<synchronous>, transform_indices = @transform_4, window_bounds = array<i64: 1, 4>}, {transform_indices = @transform_5, window_bounds = array<i64: 8, 4>}]} {
    %c0 = arith.constant 0 : index
    %c0_0 = arith.constant 0 : index
    %0 = vector.load %arg2[%c0, %c0_0] : memref<4x64xf32, #tpu.memory_space<vmem>>, vector<4x64xf32>
    %c0_1 = arith.constant 0 : index
    %c0_2 = arith.constant 0 : index
    %c0_3 = arith.constant 0 : index
    %1 = vector.load %arg3[%c0_1, %c0_2, %c0_3] : memref<4x64x64xbf16, #tpu.memory_space<vmem>>, vector<1x64x64xbf16>
    %2 = vector.shape_cast %1 : vector<1x64x64xbf16> to vector<64x64xbf16>
    %c1 = arith.constant 1 : index
    %c0_4 = arith.constant 0 : index
    %c0_5 = arith.constant 0 : index
    %3 = vector.load %arg3[%c1, %c0_4, %c0_5] : memref<4x64x64xbf16, #tpu.memory_space<vmem>>, vector<1x64x64xbf16>
    %4 = vector.shape_cast %3 : vector<1x64x64xbf16> to vector<64x64xbf16>
    %c2 = arith.constant 2 : index
    %c0_6 = arith.constant 0 : index
    %c0_7 = arith.constant 0 : index
    %5 = vector.load %arg3[%c2, %c0_6, %c0_7] : memref<4x64x64xbf16, #tpu.memory_space<vmem>>, vector<1x64x64xbf16>
    %6 = vector.shape_cast %5 : vector<1x64x64xbf16> to vector<64x64xbf16>
    %c3 = arith.constant 3 : index
    %c0_8 = arith.constant 0 : index
    %c0_9 = arith.constant 0 : index
    %7 = vector.load %arg3[%c3, %c0_8, %c0_9] : memref<4x64x64xbf16, #tpu.memory_space<vmem>>, vector<1x64x64xbf16>
    %8 = vector.shape_cast %7 : vector<1x64x64xbf16> to vector<64x64xbf16>
    %c0_10 = arith.constant 0 : index
    %c0_11 = arith.constant 0 : index
    %9 = vector.load %arg4[%c0_10, %c0_11] : memref<64x4xbf16, #tpu.memory_space<vmem>>, vector<64x4xbf16>
    %c0_12 = arith.constant 0 : index
    %c0_13 = arith.constant 0 : index
    %10 = vector.load %arg5[%c0_12, %c0_13] : memref<1x4xf32, #tpu.memory_space<vmem>>, vector<1x4xf32>
    %c0_14 = arith.constant 0 : index
    %c0_15 = arith.constant 0 : index
    %11 = vector.load %arg1[%c0_14, %c0_15] : memref<8x64xf32, #tpu.memory_space<vmem>>, vector<8x64xf32>
    %12 = vector.extract_strided_slice %0 {offsets = [0, 0], sizes = [1, 64], strides = [1, 1]} : vector<4x64xf32> to vector<1x64xf32>
    %13 = vector.extract_strided_slice %0 {offsets = [1, 0], sizes = [1, 64], strides = [1, 1]} : vector<4x64xf32> to vector<1x64xf32>
    %cst = arith.constant dense<0.000000e+00> : vector<8xf32>
    %14 = vector.multi_reduction <add>, %11, %cst [1] : vector<8x64xf32> to vector<8xf32>
    %15 = vector.shape_cast %14 : vector<8xf32> to vector<8x1xf32>
    %cst_16 = arith.constant 6.400000e+01 : f32
    %16 = vector.broadcast %cst_16 : f32 to vector<8x1xf32>
    %17 = arith.divf %15, %16 : vector<8x1xf32>
    %18 = vector.broadcast %17 : vector<8x1xf32> to vector<8x64xf32>
    %19 = arith.subf %11, %18 : vector<8x64xf32>
    %20 = arith.mulf %19, %19 : vector<8x64xf32>
    %cst_17 = arith.constant dense<0.000000e+00> : vector<8xf32>
    %21 = vector.multi_reduction <add>, %20, %cst_17 [1] : vector<8x64xf32> to vector<8xf32>
    %22 = vector.shape_cast %21 : vector<8xf32> to vector<8x1xf32>
    %cst_18 = arith.constant 6.400000e+01 : f32
    %23 = vector.broadcast %cst_18 : f32 to vector<8x1xf32>
    %24 = arith.divf %22, %23 : vector<8x1xf32>
    %cst_19 = arith.constant 9.99999974E-6 : f32
    %25 = vector.broadcast %cst_19 : f32 to vector<8x1xf32>
    %26 = arith.addf %24, %25 : vector<8x1xf32>
    %27 = math.rsqrt %26 : vector<8x1xf32>
    %28 = vector.broadcast %27 : vector<8x1xf32> to vector<8x64xf32>
    %29 = arith.mulf %19, %28 : vector<8x64xf32>
    %30 = arith.truncf %29 : vector<8x64xf32> to vector<8x64xbf16>
    %cst_20 = arith.constant dense<0.000000e+00> : vector<8x64xf32>
    %31 = tpu.matmul %30, %2, %cst_20 {dimension_numbers = #tpu.dot_dimension_numbers<[1], [0], [0], [1], [0, 0, 1, 1], [], []>} : vector<8x64xbf16>, vector<64x64xbf16>, vector<8x64xf32> -> vector<8x64xf32>
    %32 = vector.broadcast %12 : vector<1x64xf32> to vector<8x64xf32>
    %33 = arith.addf %31, %32 : vector<8x64xf32>
    %cst_21 = arith.constant 0.000000e+00 : f32
    %34 = vector.broadcast %cst_21 : f32 to vector<8x64xf32>
    %35 = arith.maximumf %33, %34 : vector<8x64xf32>
    %36 = arith.truncf %35 : vector<8x64xf32> to vector<8x64xbf16>
    %cst_22 = arith.constant dense<0.000000e+00> : vector<8x64xf32>
    %37 = tpu.matmul %36, %4, %cst_22 {dimension_numbers = #tpu.dot_dimension_numbers<[1], [0], [0], [1], [0, 0, 1, 1], [], []>} : vector<8x64xbf16>, vector<64x64xbf16>, vector<8x64xf32> -> vector<8x64xf32>
    %38 = vector.broadcast %13 : vector<1x64xf32> to vector<8x64xf32>
    %39 = arith.addf %37, %38 : vector<8x64xf32>
    %40 = arith.addf %11, %39 : vector<8x64xf32>
    %41 = vector.extract_strided_slice %0 {offsets = [2, 0], sizes = [1, 64], strides = [1, 1]} : vector<4x64xf32> to vector<1x64xf32>
    %42 = vector.extract_strided_slice %0 {offsets = [3, 0], sizes = [1, 64], strides = [1, 1]} : vector<4x64xf32> to vector<1x64xf32>
    %cst_23 = arith.constant dense<0.000000e+00> : vector<8xf32>
    %43 = vector.multi_reduction <add>, %40, %cst_23 [1] : vector<8x64xf32> to vector<8xf32>
    %44 = vector.shape_cast %43 : vector<8xf32> to vector<8x1xf32>
    %cst_24 = arith.constant 6.400000e+01 : f32
    %45 = vector.broadcast %cst_24 : f32 to vector<8x1xf32>
    %46 = arith.divf %44, %45 : vector<8x1xf32>
    %47 = vector.broadcast %46 : vector<8x1xf32> to vector<8x64xf32>
    %48 = arith.subf %40, %47 : vector<8x64xf32>
    %49 = arith.mulf %48, %48 : vector<8x64xf32>
    %cst_25 = arith.constant dense<0.000000e+00> : vector<8xf32>
    %50 = vector.multi_reduction <add>, %49, %cst_25 [1] : vector<8x64xf32> to vector<8xf32>
    %51 = vector.shape_cast %50 : vector<8xf32> to vector<8x1xf32>
    %cst_26 = arith.constant 6.400000e+01 : f32
    %52 = vector.broadcast %cst_26 : f32 to vector<8x1xf32>
    %53 = arith.divf %51, %52 : vector<8x1xf32>
    %cst_27 = arith.constant 9.99999974E-6 : f32
    %54 = vector.broadcast %cst_27 : f32 to vector<8x1xf32>
    %55 = arith.addf %53, %54 : vector<8x1xf32>
    %56 = math.rsqrt %55 : vector<8x1xf32>
    %57 = vector.broadcast %56 : vector<8x1xf32> to vector<8x64xf32>
    %58 = arith.mulf %48, %57 : vector<8x64xf32>
    %59 = arith.truncf %58 : vector<8x64xf32> to vector<8x64xbf16>
    %cst_28 = arith.constant dense<0.000000e+00> : vector<8x64xf32>
    %60 = tpu.matmul %59, %6, %cst_28 {dimension_numbers = #tpu.dot_dimension_numbers<[1], [0], [0], [1], [0, 0, 1, 1], [], []>} : vector<8x64xbf16>, vector<64x64xbf16>, vector<8x64xf32> -> vector<8x64xf32>
    %61 = vector.broadcast %41 : vector<1x64xf32> to vector<8x64xf32>
    %62 = arith.addf %60, %61 : vector<8x64xf32>
    %cst_29 = arith.constant 0.000000e+00 : f32
    %63 = vector.broadcast %cst_29 : f32 to vector<8x64xf32>
    %64 = arith.maximumf %62, %63 : vector<8x64xf32>
    %65 = arith.truncf %64 : vector<8x64xf32> to vector<8x64xbf16>
    %cst_30 = arith.constant dense<0.000000e+00> : vector<8x64xf32>
    %66 = tpu.matmul %65, %8, %cst_30 {dimension_numbers = #tpu.dot_dimension_numbers<[1], [0], [0], [1], [0, 0, 1, 1], [], []>} : vector<8x64xbf16>, vector<64x64xbf16>, vector<8x64xf32> -> vector<8x64xf32>
    %67 = vector.broadcast %42 : vector<1x64xf32> to vector<8x64xf32>
    %68 = arith.addf %66, %67 : vector<8x64xf32>
    %69 = arith.addf %40, %68 : vector<8x64xf32>
    %cst_31 = arith.constant dense<0.000000e+00> : vector<8xf32>
    %70 = vector.multi_reduction <add>, %69, %cst_31 [1] : vector<8x64xf32> to vector<8xf32>
    %71 = vector.shape_cast %70 : vector<8xf32> to vector<8x1xf32>
    %cst_32 = arith.constant 6.400000e+01 : f32
    %72 = vector.broadcast %cst_32 : f32 to vector<8x1xf32>
    %73 = arith.divf %71, %72 : vector<8x1xf32>
    %74 = vector.broadcast %73 : vector<8x1xf32> to vector<8x64xf32>
    %75 = arith.subf %69, %74 : vector<8x64xf32>
    %76 = arith.mulf %75, %75 : vector<8x64xf32>
    %cst_33 = arith.constant dense<0.000000e+00> : vector<8xf32>
    %77 = vector.multi_reduction <add>, %76, %cst_33 [1] : vector<8x64xf32> to vector<8xf32>
    %78 = vector.shape_cast %77 : vector<8xf32> to vector<8x1xf32>
    %cst_34 = arith.constant 6.400000e+01 : f32
    %79 = vector.broadcast %cst_34 : f32 to vector<8x1xf32>
    %80 = arith.divf %78, %79 : vector<8x1xf32>
    %cst_35 = arith.constant 9.99999974E-6 : f32
    %81 = vector.broadcast %cst_35 : f32 to vector<8x1xf32>
    %82 = arith.addf %80, %81 : vector<8x1xf32>
    %83 = math.rsqrt %82 : vector<8x1xf32>
    %84 = vector.broadcast %83 : vector<8x1xf32> to vector<8x64xf32>
    %85 = arith.mulf %75, %84 : vector<8x64xf32>
    %86 = arith.truncf %85 : vector<8x64xf32> to vector<8x64xbf16>
    %cst_36 = arith.constant dense<0.000000e+00> : vector<8x4xf32>
    %87 = tpu.matmul %86, %9, %cst_36 {dimension_numbers = #tpu.dot_dimension_numbers<[1], [0], [0], [1], [0, 0, 1, 1], [], []>} : vector<8x64xbf16>, vector<64x4xbf16>, vector<8x4xf32> -> vector<8x4xf32>
    %88 = vector.broadcast %10 : vector<1x4xf32> to vector<8x4xf32>
    %89 = arith.addf %87, %88 : vector<8x4xf32>
    %c0_37 = arith.constant 0 : index
    %c0_38 = arith.constant 0 : index
    %90 = vector.load %arg6[%c0_37, %c0_38] : memref<8x4xf32, #tpu.memory_space<vmem>>, vector<8x4xf32>
    tpu.vector_store %arg6[%c0_37, %c0_38], %89 {strides = array<i32>} : memref<8x4xf32, #tpu.memory_space<vmem>>, vector<8x4xf32>,
    return
  }
  func.func @transform_0(%arg0: i32) -> (i32, i32) {
    %c0_i32 = arith.constant 0 : i32
    %c0_i32_0 = arith.constant 0 : i32
    return %arg0, %c0_i32 : i32, i32
  }
  func.func @transform_1(%arg0: i32) -> (i32, i32) {
    %c0_i32 = arith.constant 0 : i32
    %c0_i32_0 = arith.constant 0 : i32
    %c0_i32_1 = arith.constant 0 : i32
    return %c0_i32, %c0_i32_0 : i32, i32
  }
  func.func @transform_2(%arg0: i32) -> (i32, i32, i32) {
    %c0_i32 = arith.constant 0 : i32
    %c0_i32_0 = arith.constant 0 : i32
    %c0_i32_1 = arith.constant 0 : i32
    %c0_i32_2 = arith.constant 0 : i32
    return %c0_i32, %c0_i32_0, %c0_i32_1 : i32, i32, i32
  }
  func.func @transform_3(%arg0: i32) -> (i32, i32) {
    %c0_i32 = arith.constant 0 : i32
    %c0_i32_0 = arith.constant 0 : i32
    %c0_i32_1 = arith.constant 0 : i32
    return %c0_i32, %c0_i32_0 : i32, i32
  }
  func.func @transform_4(%arg0: i32) -> (i32, i32) {
    %c0_i32 = arith.constant 0 : i32
    %c0_i32_0 = arith.constant 0 : i32
    %c0_i32_1 = arith.constant 0 : i32
    return %c0_i32, %c0_i32_0 : i32, i32
  }
  func.func @transform_5(%arg0: i32) -> (i32, i32) {
    %c0_i32 = arith.constant 0 : i32
    %c0_i32_0 = arith.constant 0 : i32
    return %arg0, %c0_i32 : i32, i32
  }
}

</mosaic_0001>

<bundles_post_ra>
// kernel: res_output_forward.1
= control target key start
LH: loop header
LB: loop body
LE: loop exit
PB: predicated region body
PF: predicated region fallthrough
CT: control target
= control target key end

     0   :  { %10 = vsyncpa [#allocation3], 0  ;;  %s864_s18 = smov 0   ;;  %s934_s0 = inlined_call_operand.vmem [shape: f32[16,64], index: 0, kind: input, shape index: {}]   ;;  %s935_s1 = inlined_call_operand.vmem [shape: f32[4,64], index: 1, kind: input, shape index: {}]   ;;  %s936_s2 = inlined_call_operand.hbm [shape: bf16[4,64,64], index: 2, kind: input, shape index: {}]   ;;  %s937_s3 = inlined_call_operand.vmem [shape: bf16[64,4], index: 3, kind: input, shape index: {}]   ;;  %s938_s4 = inlined_call_operand.vmem [shape: f32[1,4], index: 4, kind: input, shape index: {}]   ;;  %s939_s5 = inlined_call_operand.vmem [shape: f32[16,4], index: 5, kind: output, shape index: {}]  }
   0x1 LB: > { %s171_s21 = sshll.u32 %s936_s2, 4  ;;  %s641_s22 = sadd.s32 4294967295, %s828_s18   ;;  %s828_s18 = sphi %s864_s18, %s16_s18   ;;  %s172_s21 = int_to_ptr.hbm [resolvable:$true] %s171_s21 }
   0x2   : > { %p643_p0 = scmp.ge.s32.totalorder %s828_s18, 1  ;;  %p157_p1 = scmp.lt.s32.totalorder %s828_s18, 3 }
   0x3   : > { %p765_p2 = scmp.eq.s32.totalorder %s641_s22, 0  ;;  %s830_s23 = smov [#allocation2]  }
   0x4   : > { %p158_p3 = pnand %p643_p0, %p157_p1  ;;  %s173_s24 = sshll.u32 %s830_s23, 4  ;;  %s174_s24 = int_to_ptr.vmem [resolvable:$true] %s173_s24 }
   0x5   : > { %s831_s25 = smov 64   ;;  %s832_s26 = smov 4  }
   0x6   : > { %p761_p4 = pneg %p158_p3  ;;  %202 = sbr.rel (%p158_p3) target bundleno = 1486 (0x5ce), region = 40 }
   0x8   : > { %p762_p5 = pnand %p765_p2, %p761_p4 }
   0xa   : > { %764 = dma.hbm_to_vmem [thread:$0]  (!%p762_p5), %s172_s21, 2048, %s174_s24, [#allocation3], %s831_s25, %s831_s25, %s832_s26  }
   0xb   : > { %823 = dma.done.wait (%p765_p2), [#allocation3], 2048  }
   0xc   : > { %825 = vsyncadd (%p765_p2), [#allocation3], 4294965248  ;;  %p229_p6 = scmp.lt.s32.totalorder %s641_s22, 1  ;;  %vm284_vm0 = vcmask 523264   ;;  %v833_v2 = vmov 64.0   ;;  %v740_v14 = vld [vmem:[#allocation2 + $0x18] sm:$0xff] }
   0xd   : > { %780 = vrcp.f32 %v833_v2  ;;  %347 = vmatpush.bf16.msra.mxu0 %v740_v14  ;;  %v739_v15 = vld [vmem:[#allocation2 + $0x10] sm:$0xff]  ;;  %v738_v16 = vld [vmem:[#allocation2 + $0x8] sm:$0xff]  ;;  %v737_v17 = vld [vmem:[#allocation2] sm:$0xff]  ;;  %vm574_vm11 = vcmask 31744  }
   0xe   : > { %s941_s22 = smov (!%p229_p6, %s641_s22), 1  ;;  %v744_v18 = vld [vmem:[#allocation2 + $0x38] sm:$0xff]  ;;  %v743_v19 = vld [vmem:[#allocation2 + $0x30] sm:$0xff]  ;;  %v742_v32 = vld [vmem:[#allocation2 + $0x28] sm:$0xff] }
   0xf   : > { %s648_s27 = sshll.u32 %s941_s22, 3  ;;  %390 = vmatpush.bf16.msra.mxu1 %v744_v18  ;;  %v741_v33 = vld [vmem:[#allocation2 + $0x20] sm:$0xff]  ;;  %v748_v52 = vld [vmem:[#allocation2 + $0x58] sm:$0xff]  ;;  %v747_v53 = vld [vmem:[#allocation2 + $0x50] sm:$0xff] }
  0x10   : > { %s232_s30 = scalar_lea.vmem %s934_s0, %s648_s27  ;;  %v893_v34 = vld [vmem:[%s935_s1] sm:$0xf]  ;;  %455 = vmatpush.bf16.msra.mxu2 %v748_v52  ;;  %v746_v54 = vld [vmem:[#allocation2 + $0x48] sm:$0xff]  ;;  %v752_v56 = vld [vmem:[#allocation2 + $0x78] sm:$0xff]  ;;  %s236_s21 = scalar_lea.vmem %s939_s5, %s648_s27 }
  0x11   : > { %v283_v0 = vld [vmem:[%s232_s30] sm:$0xff]  ;;  %348 = vmatpush.bf16.msra.mxu0 %v739_v15  ;;  %v315_v35 = vperm.slane %v893_v34, 0  ;;  %v358_v41 = vperm.slane %v893_v34, 1  ;;  %498 = vmatpush.bf16.msra.mxu3 %v752_v56  ;;  %v751_v57 = vld [vmem:[#allocation2 + $0x70] sm:$0xff]  ;;  %v466_v15 = vperm.slane %v893_v34, 3 }
  0x12   : > { %v285_v1 = vsel %vm284_vm0, %v283_v0, 0.0  ;;  %v745_v55 = vld [vmem:[#allocation2 + $0x40] sm:$0xff] }
  0x13   : > { %286 = vadd.xlane.f32.xlu0 %v285_v1  ;;  %v781_v3 = vpop.eup %780  ;;  %391 = vmatpush.bf16.msra.mxu1 %v743_v19 }
  0x14   : > { %v289_v4 = vmul.f32 64.0, %v781_v3  ;;  %vm293_vm1 = vweird.f32 %v781_v3  ;;  %456 = vmatpush.bf16.msra.mxu2 %v747_v53 }
  0x15   : > { %349 = vmatpush.bf16.msra.mxu0 %v738_v16  ;;  %499 = vmatpush.bf16.msra.mxu3 %v751_v57 }
  0x16   : > { %v290_v5 = vsub.f32 1.0, %v289_v4 }
  0x17   : > { %392 = vmatpush.bf16.msra.mxu1 %v742_v32 }
  0x18   : > { %v291_v6 = vmul.f32 %v781_v3, %v290_v5  ;;  %457 = vmatpush.bf16.msra.mxu2 %v746_v54 }
  0x19   : > { %350 = vmatpush.bf16.msra.mxu0 %v737_v17 }
  0x1a   : > { %v292_v7 = vadd.f32 %v781_v3, %v291_v6  ;;  %v750_v6 = vld [vmem:[#allocation2 + $0x68] sm:$0xff] }
  0x1b   : > { %393 = vmatpush.bf16.msra.mxu1 %v741_v33  ;;  %500 = vmatpush.bf16.msra.mxu3 %v750_v6 }
  0x1c   : > { %v884_v8 = vsel %vm293_vm1, %v781_v3, %v292_v7  ;;  %458 = vmatpush.bf16.msra.mxu2 %v745_v55  ;;  %v749_v7 = vld [vmem:[#allocation2 + $0x60] sm:$0xff] }
  0x1f   : > { %501 = vmatpush.bf16.msra.mxu3 %v749_v7 }
  0x86   : > { %v287_v9 = vpop.xlane.xlu0 %286 }
  0x87   : > { %v295_v10 = vmul.f32 %v884_v8, %v287_v9  ;;  %v423_v9 = vperm.slane %v893_v34, 2 }
  0x89   : > { %v296_v11 = vsub.f32 %v283_v0, %v295_v10 }
  0x8b   : > { %v297_v12 = vmul.f32 %v296_v11, %v296_v11 }
  0x8d   : > { %v298_v13 = vsel %vm284_vm0, %v297_v12, 0.0 }
  0x8e   : > { %299 = vadd.xlane.f32.xlu0 %v298_v13 }
 0x101   : > { %v300_v20 = vpop.xlane.xlu0 %299 }
 0x102   : > { %v301_v21 = vmul.f32 %v300_v20, %v884_v8 }
 0x104   : > { %v302_v22 = vadd.f32 1e-05, %v301_v21 }
 0x106   : > { %782 = vrsqrt.f32 %v302_v22  ;;  %vm309_vm3 = vweird.f32 %v302_v22 }
 0x10c   : > { %v783_v23 = vpop.eup %782 }
 0x10d   : > { %v304_v24 = vmul.f32 %v783_v23, %v302_v22  ;;  %vm310_vm2 = vweird.f32 %v783_v23 }
 0x10e   : > { %vm311_vm4 = vmor %vm309_vm3, %vm310_vm2 }
 0x10f   : > { %v305_v25 = vmul.f32 %v783_v23, %v304_v24 }
 0x111   : > { %v306_v26 = vmul.f32 0.5, %v305_v25 }
 0x113   : > { %v307_v27 = vsub.f32 1.5, %v306_v26  ;;  %v756_v26 = vld [vmem:[%s937_s3 + $0x18] sm:$0xff] }
 0x114   : > { %565 = vmatpush.bf16.msrb.mxu0 %v756_v26 }
 0x115   : > { %v308_v28 = vmul.f32 %v783_v23, %v307_v27  ;;  %v755_v27 = vld [vmem:[%s937_s3 + $0x10] sm:$0xff] }
 0x117   : > { %v312_v29 = vsel %vm311_vm4, %v783_v23, %v308_v28  ;;  %v754_v28 = vld [vmem:[%s937_s3 + $0x8] sm:$0xff] }
 0x118   : > { %v313_v30 = vmul.f32 %v312_v29, %v296_v11  ;;  %566 = vmatpush.bf16.msrb.mxu0 %v755_v27  ;;  %v753_v29 = vld [vmem:[%s937_s3] sm:$0xff] }
 0x11a   : > { %v314_v31 = vpack.c.bf16 %v313_v30, %v313_v30 }
 0x11c   : > { %666 = vmatmul.msk.bf16.vlgmr.msra.gmra.mxu0 %vm284_vm0, %v314_v31 }
 0x11d   : > { %567 = vmatpush.bf16.msrb.mxu0 %v754_v28 }
 0x121   : > { %568 = vmatpush.bf16.msrb.mxu0 %v753_v29 }
 0x199   : > { %v352_v36 = vpop.f32.mrf.mxu0 }
 0x19a   : > { %v353_v37 = vadd.f32 %v352_v36, %v315_v35 }
 0x19c   : > { %v356_v38 = vmax.f32 %v353_v37, 0.0 }
 0x19e   : > { %v357_v39 = vpack.c.bf16 %v356_v38, %v356_v38 }
 0x1a0   : > { %683 = vmatmul.msk.bf16.vlgmr.msra.gmra.mxu1 %vm284_vm0, %v357_v39 }
 0x1a1   : > { %v354_v40 = vpop.f32.mrf.mxu0 }
 0x21d   : > { %v395_v42 = vpop.f32.mrf.mxu1 }
 0x21e   : > { %v396_v43 = vadd.f32 %v395_v42, %v358_v41 }
 0x220   : > { %v399_v44 = vadd.f32 %v396_v43, %v283_v0 }
 0x222   : > { %v400_v45 = vsel %vm284_vm0, %v399_v44, 0.0 }
 0x223   : > { %401 = vadd.xlane.f32.xlu1 %v400_v45 }
 0x225   : > { %v397_v46 = vpop.f32.mrf.mxu1 }
 0x296   : > { %v402_v47 = vpop.xlane.xlu1 %401 }
 0x297   : > { %v403_v48 = vmul.f32 %v402_v47, %v884_v8 }
 0x299   : > { %v404_v49 = vsub.f32 %v399_v44, %v403_v48 }
 0x29b   : > { %v405_v50 = vmul.f32 %v404_v49, %v404_v49 }
 0x29d   : > { %v406_v51 = vsel %vm284_vm0, %v405_v50, 0.0 }
 0x29e   : > { %407 = vadd.xlane.f32.xlu1 %v406_v51 }
 0x311   : > { %v408_v58 = vpop.xlane.xlu1 %407 }
 0x312   : > { %v409_v59 = vmul.f32 %v408_v58, %v884_v8 }
 0x314   : > { %v410_v60 = vadd.f32 1e-05, %v409_v59 }
 0x316   : > { %784 = vrsqrt.f32 %v410_v60  ;;  %vm417_vm6 = vweird.f32 %v410_v60 }
 0x31c   : > { %v785_v61 = vpop.eup %784 }
 0x31d   : > { %v412_v62 = vmul.f32 %v785_v61, %v410_v60  ;;  %vm418_vm5 = vweird.f32 %v785_v61 }
 0x31e   : > { %vm419_vm7 = vmor %vm417_vm6, %vm418_vm5 }
 0x31f   : > { %v413_v63 = vmul.f32 %v785_v61, %v412_v62 }
 0x321   : > { %v414_v0 = vmul.f32 0.5, %v413_v63 }
 0x323   : > { %v415_v1 = vsub.f32 1.5, %v414_v0 }
 0x325   : > { %v416_v2 = vmul.f32 %v785_v61, %v415_v1 }
 0x327   : > { %v420_v3 = vsel %vm419_vm7, %v785_v61, %v416_v2 }
 0x328   : > { %v421_v4 = vmul.f32 %v420_v3, %v404_v49 }
 0x32a   : > { %v422_v5 = vpack.c.bf16 %v421_v4, %v421_v4 }
 0x32c   : > { %700 = vmatmul.msk.bf16.vlgmr.msra.gmra.mxu2 %vm284_vm0, %v422_v5 }
 0x3af   : > { %v460_v10 = vpop.f32.mrf.mxu2 }
 0x3b0   : > { %v461_v11 = vadd.f32 %v460_v10, %v423_v9 }
 0x3b2   : > { %v464_v12 = vmax.f32 %v461_v11, 0.0 }
 0x3b4   : > { %v465_v13 = vpack.c.bf16 %v464_v12, %v464_v12 }
 0x3b6   : > { %717 = vmatmul.msk.bf16.vlgmr.msra.gmra.mxu3 %vm284_vm0, %v465_v13 }
 0x3b7   : > { %v462_v14 = vpop.f32.mrf.mxu2 }
 0x439   : > { %v503_v16 = vpop.f32.mrf.mxu3 }
 0x43a   : > { %v504_v17 = vadd.f32 %v503_v16, %v466_v15 }
 0x43c   : > { %v507_v18 = vadd.f32 %v504_v17, %v399_v44 }
 0x43e   : > { %v508_v19 = vsel %vm284_vm0, %v507_v18, 0.0 }
 0x43f   : > { %509 = vadd.xlane.f32.xlu2 %v508_v19 }
 0x441   : > { %v505_v20 = vpop.f32.mrf.mxu3 }
 0x4b2   : > { %v510_v21 = vpop.xlane.xlu2 %509 }
 0x4b3   : > { %v511_v22 = vmul.f32 %v510_v21, %v884_v8 }
 0x4b5   : > { %v512_v23 = vsub.f32 %v507_v18, %v511_v22 }
 0x4b7   : > { %v513_v24 = vmul.f32 %v512_v23, %v512_v23 }
 0x4b9   : > { %v514_v25 = vsel %vm284_vm0, %v513_v24, 0.0 }
 0x4ba   : > { %515 = vadd.xlane.f32.xlu2 %v514_v25 }
 0x52d   : > { %v516_v30 = vpop.xlane.xlu2 %515 }
 0x52e   : > { %v517_v31 = vmul.f32 %v516_v30, %v884_v8  ;;  %v779_v8 = vld [vmem:[%s938_s4] ss:$0 sm:$0xff] }
 0x530   : > { %v518_v32 = vadd.f32 1e-05, %v517_v31 }
 0x532   : > { %786 = vrsqrt.f32 %v518_v32  ;;  %vm525_vm9 = vweird.f32 %v518_v32 }
 0x538   : > { %v787_v33 = vpop.eup %786 }
 0x539   : > { %v520_v34 = vmul.f32 %v787_v33, %v518_v32  ;;  %vm526_vm8 = vweird.f32 %v787_v33 }
 0x53a   : > { %vm527_vm10 = vmor %vm525_vm9, %vm526_vm8 }
 0x53b   : > { %v521_v35 = vmul.f32 %v787_v33, %v520_v34 }
 0x53d   : > { %v522_v36 = vmul.f32 0.5, %v521_v35 }
 0x53f   : > { %v523_v37 = vsub.f32 1.5, %v522_v36 }
 0x541   : > { %v524_v38 = vmul.f32 %v787_v33, %v523_v37 }
 0x543   : > { %v528_v39 = vsel %vm527_vm10, %v787_v33, %v524_v38 }
 0x544   : > { %v529_v40 = vmul.f32 %v528_v39, %v512_v23 }
 0x546   : > { %v530_v41 = vpack.c.bf16 %v529_v40, %v529_v40 }
 0x548   : > { %734 = vmatmul.msk.bf16.vlgmr.msrb.gmra.mxu0 %vm284_vm0, %v530_v41 }
 0x5c5   : > { %v570_v42 = vpop.f32.mrf.mxu0 }
 0x5c6   : > { %v571_v43 = vadd.f32 %v779_v8, %v570_v42 }
 0x5c8   : > { %575 = vst.msk [vmem:[%s236_s21] sm:$0xff] %vm574_vm11, %v571_v43 }
 0x5cd   : > { %v572_v44 = vpop.f32.mrf.mxu0 }
 0x5ce PF: > { %s16_s18 = sadd.s32 1, %s828_s18  }
 0x5cf   : > { %p13_p7 = scmp.ge.s32.totalorder %s16_s18, 4  }
 0x5d1   :  { %15 = sbr.rel (!%p13_p7) target bundleno = 1 (0x1), region = 78 }
 0x5d6   :  { %595 = vsyncpa [#allocation3], 1 }
 0x5d7   :  { %597 = vsyncpa [#allocation3 + $0x1], 1 }

</bundles_post_ra>
